<compile_context>
chip_gen: v7x
topology: tpu7x:2x2x1
jax: 0.10.0
libtpu: 0.0.40
codegen_flags: <defaults>
</compile_context>

<pallas_src>
import functools

import jax
import jax.numpy as jnp
from jax.experimental import pallas as pl
from jax.experimental.pallas import tpu as pltpu

_BN_EPS = 1e-5
_LANE = 128          # vreg lane width: output feature axis padded to this
_SUBLANE_BF16 = 16   # bf16 sublane pack: batch and contraction axes padded to this


def _round_up(x, m):
    return ((x + m - 1) // m) * m


def _make_mlp_kernel(num_layers, n_real, n_pad, k_pad):
    """Fused (Linear -> BatchNorm1d) x num_layers kernel body."""
    need_row_mask = n_pad != n_real
    inv_n = 1.0 / float(n_real)

    def kernel(x_ref, w_ref, gamma_ref, beta_ref, o_ref):
        # x_ref:     (n_pad, k_pad)   bf16  zero-padded, pre-cast input
        # w_ref:     (L, k_pad, P)    bf16  stacked, pre-transposed, zero-padded W
        # gamma_ref: (L, 1, P)        f32   (ones in padded columns)
        # beta_ref:  (L, 1, P)        f32   (zeros in padded columns)
        # o_ref:     (n_pad, P)       f32   lane-dense output (sliced in wrapper)
        if need_row_mask:
            row = jax.lax.broadcasted_iota(jnp.int32, (n_pad, 1), 0)
            row_mask = (row < n_real).astype(jnp.float32)

        lhs = x_ref[...]                      # bf16 MXU LHS, stays in vregs/VMEM
        h = None
        for l in range(num_layers):           # static unroll (L small & known)
            # Linear, bias-free (bias cancelled exactly by the BN batch mean).
            y = jnp.dot(lhs, w_ref[l], preferred_element_type=jnp.float32)

            # BatchNorm1d, training mode, one-pass stats in f32.
            # Padded batch rows of y are exactly 0, so full-column sums over
            # n_pad rows equal the sums over the n_real real rows.
            mean = jnp.sum(y, axis=0, keepdims=True) * inv_n
            mean_sq = jnp.sum(y * y, axis=0, keepdims=True) * inv_n
            var = jnp.maximum(mean_sq - mean * mean, 0.0)      # biased variance
            scale = gamma_ref[l] * jax.lax.rsqrt(var + _BN_EPS)  # (1, P)
            h = (y - mean) * scale + beta_ref[l]                  # one NxP FMA

            if need_row_mask:
                # Pad rows became (beta - mean*scale); force them back to 0 so
                # the next layer's batch statistics stay exact.
                h = h * row_mask
            if l + 1 < num_layers:
                lhs = h[:, :k_pad].astype(jnp.bfloat16)
        o_ref[...] = h

    return kernel


class MLPParams:
    """Parameters mirroring the PyTorch MLP init.

    Linear weights use the PyTorch default init U(-1/sqrt(in_dim), 1/sqrt(in_dim));
    BatchNorm1d gamma=1, beta=0.  The Linear bias is NOT materialized: with
    training-mode BatchNorm right after the Linear it is subtracted back out by the
    batch mean, so the forward pass does not depend on it.
    """

    def __init__(self, input_dim, output_dims, key):
        dims = [input_dim, *output_dims]
        self.input_dim = input_dim
        self.output_dims = list(output_dims)
        self.num_layers = len(output_dims)
        # Output/lane axis padded to 128; contraction axis only to the bf16
        # sublane pack (review item: don't pad K to 128).
        self.padded_dim = _round_up(max(dims), _LANE)
        self.k_pad = _round_up(max(dims[:-1]), _SUBLANE_BF16)
        P, K = self.padded_dim, self.k_pad
        assert K <= P, "contraction pad must fit inside the lane-padded h"

        w_pad, g_pad, b_pad = [], [], []
        self.ref_layers = []
        for in_dim, out_dim in zip(dims[:-1], dims[1:]):
            key, kw = jax.random.split(key)
            bound = 1.0 / (in_dim ** 0.5)
            w = jax.random.uniform(kw, (out_dim, in_dim), jnp.float32, -bound, bound)
            w_t = w.T                                        # (in_dim, out_dim)
            gamma = jnp.ones((1, out_dim), jnp.float32)
            beta = jnp.zeros((1, out_dim), jnp.float32)
            self.ref_layers.append((w_t, gamma, beta))

            # Zero-padded W rows/cols + gamma=1 / beta=0 in the pad keep padded
            # activation columns exactly 0 every layer (invariant, do not change).
            w_pad.append(jnp.zeros((K, P), jnp.float32).at[:in_dim, :out_dim].set(w_t))
            g_pad.append(jnp.ones((1, P), jnp.float32).at[:, :out_dim].set(gamma))
            b_pad.append(jnp.zeros((1, P), jnp.float32).at[:, :out_dim].set(beta))

        # Kernel-ready stacks: weights pre-transposed to (in, out), zero-padded to
        # (K, P), bf16 (native MXU input dtype, half the VMEM/DMA bytes).
        self.w_stack = jnp.stack(w_pad).astype(jnp.bfloat16)   # (L, K, P) bf16
        self.gamma_stack = jnp.stack(g_pad)                    # (L, 1, P) f32
        self.beta_stack = jnp.stack(b_pad)                     # (L, 1, P) f32


@functools.partial(
    jax.jit,
    static_argnames=("num_layers", "input_dim", "out_dim", "k_pad", "padded_dim"),
)
def _mlp_forward_jit(x, w_stack, gamma_stack, beta_stack, *, num_layers,
                     input_dim, out_dim, k_pad, padded_dim):
    n = x.shape[0]
    P = padded_dim
    n_pad = _round_up(n, _SUBLANE_BF16)

    # Pre-cast to bf16 (matches the matmul input dtype) and zero-pad batch/K.
    x_pad = jnp.zeros((n_pad, k_pad), jnp.bfloat16)
    x_pad = x_pad.at[:n, :input_dim].set(x.astype(jnp.bfloat16))

    kernel = _make_mlp_kernel(num_layers, n, n_pad, k_pad)
    vmem = pl.BlockSpec(memory_space=pltpu.MemorySpace.VMEM)

    bytes_accessed = (x_pad.size * 2 + w_stack.size * 2
                      + gamma_stack.size * 4 + beta_stack.size * 4
                      + n_pad * P * 4)
    cost = pl.CostEstimate(
        flops=2 * num_layers * n_pad * k_pad * P + 10 * num_layers * n_pad * P,
        transcendentals=num_layers * P,            # one rsqrt per feature per layer
        bytes_accessed=bytes_accessed,
    )

    out_pad = pl.pallas_call(
        kernel,
        out_shape=jax.ShapeDtypeStruct((n_pad, P), jnp.float32),
        in_specs=[vmem, vmem, vmem, vmem],
        out_specs=vmem,
        cost_estimate=cost,
    )(x_pad, w_stack, gamma_stack, beta_stack)

    # Lane-dense kernel store; the slice to the real (n, out_dim) fuses under jit.
    return out_pad[:n, :out_dim]


def mlp_forward(params: MLPParams, x):
    """MLP forward pass: one jitted dispatch wrapping one fused Pallas kernel."""
    assert x.shape[1] == params.input_dim
    return _mlp_forward_jit(
        x, params.w_stack, params.gamma_stack, params.beta_stack,
        num_layers=params.num_layers, input_dim=params.input_dim,
        out_dim=params.output_dims[-1], k_pad=params.k_pad,
        padded_dim=params.padded_dim)


def mlp_reference(params: MLPParams, x):
    """Pure-JAX reference with the kernel's precision policy
    (bf16 MXU inputs, f32 accumulation, f32 BatchNorm statistics)."""
    h = x.astype(jnp.float32)
    for (w_t, gamma, beta) in params.ref_layers:
        y = jnp.dot(h.astype(jnp.bfloat16), w_t.astype(jnp.bfloat16),
                    preferred_element_type=jnp.float32)
        mean = jnp.mean(y, axis=0, keepdims=True)
        var = jnp.mean((y - mean) ** 2, axis=0, keepdims=True)   # biased variance
        h = gamma * (y - mean) * jax.lax.rsqrt(var + _BN_EPS) + beta
    return h


if __name__ == "__main__":
    key = jax.random.PRNGKey(0)
    batch = 8
    input_dim = 16
    output_dims = [32, 32, 8]

    key, kx, kp = jax.random.split(key, 3)
    x = jax.random.normal(kx, (batch, input_dim), jnp.float32)
    params = MLPParams(input_dim, output_dims, kp)

    out = jax.block_until_ready(mlp_forward(params, x))
    ref = mlp_reference(params, x)

    assert out.shape == (batch, output_dims[-1])
    # Tolerance covers bf16 rounding of the MXU inputs interacting with the
    # one-pass (kernel) vs two-pass (reference) variance formulations.
    assert jnp.allclose(out, ref, atol=2e-3, rtol=2e-3), "mismatch vs reference"

    print("KERNEL_OK")
</pallas_src>

<mosaic_0001>
module attributes {stable_mosaic.version = 11 : i64} {
  func.func @kernel(%arg0: memref<16x32xbf16, #tpu.memory_space<vmem>>, %arg1: memref<3x32x128xbf16, #tpu.memory_space<vmem>>, %arg2: memref<3x1x128xf32, #tpu.memory_space<vmem>>, %arg3: memref<3x1x128xf32, #tpu.memory_space<vmem>>, %arg4: memref<16x128xf32, #tpu.memory_space<vmem>>) attributes {dimension_semantics = [], scalar_prefetch = 0 : i64, scratch_operands = 0 : i64, tpu.core_type = #tpu.core_type<tc>} {
    %0 = tpu.iota {dimensions = array<i32: 0>} : vector<16x1xi32>
    %c8_i32 = arith.constant 8 : i32
    %1 = vector.broadcast %c8_i32 : i32 to vector<16x1xi32>
    %2 = arith.cmpi slt, %0, %1 : vector<16x1xi32>
    %3 = arith.extui %2 : vector<16x1xi1> to vector<16x1xi32>
    %4 = arith.sitofp %3 : vector<16x1xi32> to vector<16x1xf32>
    %c0 = arith.constant 0 : index
    %c0_0 = arith.constant 0 : index
    %5 = vector.load %arg0[%c0, %c0_0] : memref<16x32xbf16, #tpu.memory_space<vmem>>, vector<16x32xbf16>
    %c0_1 = arith.constant 0 : index
    %c0_2 = arith.constant 0 : index
    %c0_3 = arith.constant 0 : index
    %6 = vector.load %arg1[%c0_1, %c0_2, %c0_3] : memref<3x32x128xbf16, #tpu.memory_space<vmem>>, vector<1x32x128xbf16>
    %7 = vector.shape_cast %6 : vector<1x32x128xbf16> to vector<32x128xbf16>
    %cst = arith.constant dense<0.000000e+00> : vector<16x128xf32>
    %8 = tpu.matmul %5, %7, %cst {dimension_numbers = #tpu.dot_dimension_numbers<[1], [0], [0], [1], [0, 0, 1, 1], [], []>} : vector<16x32xbf16>, vector<32x128xbf16>, vector<16x128xf32> -> vector<16x128xf32>
    %cst_4 = arith.constant dense<0.000000e+00> : vector<128xf32>
    %9 = vector.multi_reduction <add>, %8, %cst_4 [0] : vector<16x128xf32> to vector<128xf32>
    %10 = vector.shape_cast %9 : vector<128xf32> to vector<1x128xf32>
    %cst_5 = arith.constant 1.250000e-01 : f32
    %11 = vector.broadcast %cst_5 : f32 to vector<1x128xf32>
    %12 = arith.mulf %10, %11 : vector<1x128xf32>
    %13 = arith.mulf %8, %8 : vector<16x128xf32>
    %cst_6 = arith.constant dense<0.000000e+00> : vector<128xf32>
    %14 = vector.multi_reduction <add>, %13, %cst_6 [0] : vector<16x128xf32> to vector<128xf32>
    %15 = vector.shape_cast %14 : vector<128xf32> to vector<1x128xf32>
    %cst_7 = arith.constant 1.250000e-01 : f32
    %16 = vector.broadcast %cst_7 : f32 to vector<1x128xf32>
    %17 = arith.mulf %15, %16 : vector<1x128xf32>
    %18 = arith.mulf %12, %12 : vector<1x128xf32>
    %19 = arith.subf %17, %18 : vector<1x128xf32>
    %cst_8 = arith.constant 0.000000e+00 : f32
    %20 = vector.broadcast %cst_8 : f32 to vector<1x128xf32>
    %21 = arith.maximumf %19, %20 : vector<1x128xf32>
    %c0_9 = arith.constant 0 : index
    %c0_10 = arith.constant 0 : index
    %c0_11 = arith.constant 0 : index
    %22 = vector.load %arg2[%c0_9, %c0_10, %c0_11] : memref<3x1x128xf32, #tpu.memory_space<vmem>>, vector<1x1x128xf32>
    %23 = vector.shape_cast %22 : vector<1x1x128xf32> to vector<1x128xf32>
    %cst_12 = arith.constant 9.99999974E-6 : f32
    %24 = vector.broadcast %cst_12 : f32 to vector<1x128xf32>
    %25 = arith.addf %21, %24 : vector<1x128xf32>
    %26 = math.rsqrt %25 : vector<1x128xf32>
    %27 = arith.mulf %23, %26 : vector<1x128xf32>
    %28 = vector.broadcast %12 : vector<1x128xf32> to vector<16x128xf32>
    %29 = arith.subf %8, %28 : vector<16x128xf32>
    %30 = vector.broadcast %27 : vector<1x128xf32> to vector<16x128xf32>
    %31 = arith.mulf %29, %30 : vector<16x128xf32>
    %c0_13 = arith.constant 0 : index
    %c0_14 = arith.constant 0 : index
    %c0_15 = arith.constant 0 : index
    %32 = vector.load %arg3[%c0_13, %c0_14, %c0_15] : memref<3x1x128xf32, #tpu.memory_space<vmem>>, vector<1x1x128xf32>
    %33 = vector.shape_cast %32 : vector<1x1x128xf32> to vector<1x128xf32>
    %34 = vector.broadcast %33 : vector<1x128xf32> to vector<16x128xf32>
    %35 = arith.addf %31, %34 : vector<16x128xf32>
    %36 = vector.broadcast %4 : vector<16x1xf32> to vector<16x128xf32>
    %37 = arith.mulf %35, %36 : vector<16x128xf32>
    %38 = vector.extract_strided_slice %37 {offsets = [0, 0], sizes = [16, 32], strides = [1, 1]} : vector<16x128xf32> to vector<16x32xf32>
    %39 = arith.truncf %38 : vector<16x32xf32> to vector<16x32xbf16>
    %c1 = arith.constant 1 : index
    %c0_16 = arith.constant 0 : index
    %c0_17 = arith.constant 0 : index
    %40 = vector.load %arg1[%c1, %c0_16, %c0_17] : memref<3x32x128xbf16, #tpu.memory_space<vmem>>, vector<1x32x128xbf16>
    %41 = vector.shape_cast %40 : vector<1x32x128xbf16> to vector<32x128xbf16>
    %cst_18 = arith.constant dense<0.000000e+00> : vector<16x128xf32>
    %42 = tpu.matmul %39, %41, %cst_18 {dimension_numbers = #tpu.dot_dimension_numbers<[1], [0], [0], [1], [0, 0, 1, 1], [], []>} : vector<16x32xbf16>, vector<32x128xbf16>, vector<16x128xf32> -> vector<16x128xf32>
    %cst_19 = arith.constant dense<0.000000e+00> : vector<128xf32>
    %43 = vector.multi_reduction <add>, %42, %cst_19 [0] : vector<16x128xf32> to vector<128xf32>
    %44 = vector.shape_cast %43 : vector<128xf32> to vector<1x128xf32>
    %cst_20 = arith.constant 1.250000e-01 : f32
    %45 = vector.broadcast %cst_20 : f32 to vector<1x128xf32>
    %46 = arith.mulf %44, %45 : vector<1x128xf32>
    %47 = arith.mulf %42, %42 : vector<16x128xf32>
    %cst_21 = arith.constant dense<0.000000e+00> : vector<128xf32>
    %48 = vector.multi_reduction <add>, %47, %cst_21 [0] : vector<16x128xf32> to vector<128xf32>
    %49 = vector.shape_cast %48 : vector<128xf32> to vector<1x128xf32>
    %cst_22 = arith.constant 1.250000e-01 : f32
    %50 = vector.broadcast %cst_22 : f32 to vector<1x128xf32>
    %51 = arith.mulf %49, %50 : vector<1x128xf32>
    %52 = arith.mulf %46, %46 : vector<1x128xf32>
    %53 = arith.subf %51, %52 : vector<1x128xf32>
    %cst_23 = arith.constant 0.000000e+00 : f32
    %54 = vector.broadcast %cst_23 : f32 to vector<1x128xf32>
    %55 = arith.maximumf %53, %54 : vector<1x128xf32>
    %c1_24 = arith.constant 1 : index
    %c0_25 = arith.constant 0 : index
    %c0_26 = arith.constant 0 : index
    %56 = vector.load %arg2[%c1_24, %c0_25, %c0_26] : memref<3x1x128xf32, #tpu.memory_space<vmem>>, vector<1x1x128xf32>
    %57 = vector.shape_cast %56 : vector<1x1x128xf32> to vector<1x128xf32>
    %cst_27 = arith.constant 9.99999974E-6 : f32
    %58 = vector.broadcast %cst_27 : f32 to vector<1x128xf32>
    %59 = arith.addf %55, %58 : vector<1x128xf32>
    %60 = math.rsqrt %59 : vector<1x128xf32>
    %61 = arith.mulf %57, %60 : vector<1x128xf32>
    %62 = vector.broadcast %46 : vector<1x128xf32> to vector<16x128xf32>
    %63 = arith.subf %42, %62 : vector<16x128xf32>
    %64 = vector.broadcast %61 : vector<1x128xf32> to vector<16x128xf32>
    %65 = arith.mulf %63, %64 : vector<16x128xf32>
    %c1_28 = arith.constant 1 : index
    %c0_29 = arith.constant 0 : index
    %c0_30 = arith.constant 0 : index
    %66 = vector.load %arg3[%c1_28, %c0_29, %c0_30] : memref<3x1x128xf32, #tpu.memory_space<vmem>>, vector<1x1x128xf32>
    %67 = vector.shape_cast %66 : vector<1x1x128xf32> to vector<1x128xf32>
    %68 = vector.broadcast %67 : vector<1x128xf32> to vector<16x128xf32>
    %69 = arith.addf %65, %68 : vector<16x128xf32>
    %70 = vector.broadcast %4 : vector<16x1xf32> to vector<16x128xf32>
    %71 = arith.mulf %69, %70 : vector<16x128xf32>
    %72 = vector.extract_strided_slice %71 {offsets = [0, 0], sizes = [16, 32], strides = [1, 1]} : vector<16x128xf32> to vector<16x32xf32>
    %73 = arith.truncf %72 : vector<16x32xf32> to vector<16x32xbf16>
    %c2 = arith.constant 2 : index
    %c0_31 = arith.constant 0 : index
    %c0_32 = arith.constant 0 : index
    %74 = vector.load %arg1[%c2, %c0_31, %c0_32] : memref<3x32x128xbf16, #tpu.memory_space<vmem>>, vector<1x32x128xbf16>
    %75 = vector.shape_cast %74 : vector<1x32x128xbf16> to vector<32x128xbf16>
    %cst_33 = arith.constant dense<0.000000e+00> : vector<16x128xf32>
    %76 = tpu.matmul %73, %75, %cst_33 {dimension_numbers = #tpu.dot_dimension_numbers<[1], [0], [0], [1], [0, 0, 1, 1], [], []>} : vector<16x32xbf16>, vector<32x128xbf16>, vector<16x128xf32> -> vector<16x128xf32>
    %cst_34 = arith.constant dense<0.000000e+00> : vector<128xf32>
    %77 = vector.multi_reduction <add>, %76, %cst_34 [0] : vector<16x128xf32> to vector<128xf32>
    %78 = vector.shape_cast %77 : vector<128xf32> to vector<1x128xf32>
    %cst_35 = arith.constant 1.250000e-01 : f32
    %79 = vector.broadcast %cst_35 : f32 to vector<1x128xf32>
    %80 = arith.mulf %78, %79 : vector<1x128xf32>
    %81 = arith.mulf %76, %76 : vector<16x128xf32>
    %cst_36 = arith.constant dense<0.000000e+00> : vector<128xf32>
    %82 = vector.multi_reduction <add>, %81, %cst_36 [0] : vector<16x128xf32> to vector<128xf32>
    %83 = vector.shape_cast %82 : vector<128xf32> to vector<1x128xf32>
    %cst_37 = arith.constant 1.250000e-01 : f32
    %84 = vector.broadcast %cst_37 : f32 to vector<1x128xf32>
    %85 = arith.mulf %83, %84 : vector<1x128xf32>
    %86 = arith.mulf %80, %80 : vector<1x128xf32>
    %87 = arith.subf %85, %86 : vector<1x128xf32>
    %cst_38 = arith.constant 0.000000e+00 : f32
    %88 = vector.broadcast %cst_38 : f32 to vector<1x128xf32>
    %89 = arith.maximumf %87, %88 : vector<1x128xf32>
    %c2_39 = arith.constant 2 : index
    %c0_40 = arith.constant 0 : index
    %c0_41 = arith.constant 0 : index
    %90 = vector.load %arg2[%c2_39, %c0_40, %c0_41] : memref<3x1x128xf32, #tpu.memory_space<vmem>>, vector<1x1x128xf32>
    %91 = vector.shape_cast %90 : vector<1x1x128xf32> to vector<1x128xf32>
    %cst_42 = arith.constant 9.99999974E-6 : f32
    %92 = vector.broadcast %cst_42 : f32 to vector<1x128xf32>
    %93 = arith.addf %89, %92 : vector<1x128xf32>
    %94 = math.rsqrt %93 : vector<1x128xf32>
    %95 = arith.mulf %91, %94 : vector<1x128xf32>
    %96 = vector.broadcast %80 : vector<1x128xf32> to vector<16x128xf32>
    %97 = arith.subf %76, %96 : vector<16x128xf32>
    %98 = vector.broadcast %95 : vector<1x128xf32> to vector<16x128xf32>
    %99 = arith.mulf %97, %98 : vector<16x128xf32>
    %c2_43 = arith.constant 2 : index
    %c0_44 = arith.constant 0 : index
    %c0_45 = arith.constant 0 : index
    %100 = vector.load %arg3[%c2_43, %c0_44, %c0_45] : memref<3x1x128xf32, #tpu.memory_space<vmem>>, vector<1x1x128xf32>
    %101 = vector.shape_cast %100 : vector<1x1x128xf32> to vector<1x128xf32>
    %102 = vector.broadcast %101 : vector<1x128xf32> to vector<16x128xf32>
    %103 = arith.addf %99, %102 : vector<16x128xf32>
    %104 = vector.broadcast %4 : vector<16x1xf32> to vector<16x128xf32>
    %105 = arith.mulf %103, %104 : vector<16x128xf32>
    %c0_46 = arith.constant 0 : index
    %c0_47 = arith.constant 0 : index
    %106 = vector.load %arg4[%c0_46, %c0_47] : memref<16x128xf32, #tpu.memory_space<vmem>>, vector<16x128xf32>
    tpu.vector_store %arg4[%c0_46, %c0_47], %105 {strides = array<i32>} : memref<16x128xf32, #tpu.memory_space<vmem>>, vector<16x128xf32>,
    return
  }
}

</mosaic_0001>

<bundles_post_ra>
// kernel: _mlp_forward_jit.1
= control target key start
LH: loop header
LB: loop body
LE: loop exit
PB: predicated region body
PF: predicated region fallthrough
CT: control target
= control target key end

     0   :  { %9 = vsyncpa [#allocation3], 0  ;;  %s474_s15 = smov [#allocation2]   ;;  %s560_s0 = inlined_call_operand.vmem [shape: bf16[16,32], index: 0, kind: input, shape index: {}]   ;;  %s561_s1 = inlined_call_operand.hbm [shape: bf16[3,32,128], index: 1, kind: input, shape index: {}]   ;;  %s562_s2 = inlined_call_operand.vmem [shape: f32[3,1,128], index: 2, kind: input, shape index: {}]   ;;  %s563_s3 = inlined_call_operand.vmem [shape: f32[3,1,128], index: 3, kind: input, shape index: {}]   ;;  %s564_s4 = inlined_call_operand.vmem [shape: f32[16,128], index: 4, kind: output, shape index: {}]  }
   0x1   :  { %s17_s16 = sshll.u32 %s474_s15, 4  ;;  %s450_s19 = scalar_lea.hbm %s561_s1, 768  ;;  %s18_s16 = int_to_ptr.vmem [resolvable:$true] %s17_s16 }
   0x2   :  { %p451_p0 = scmp.ne.s32.totalorder %s561_s1, %s450_s19  ;;  %p454_p1 = scmp.lt.u32.totalorder %s450_s19, %s561_s1 }
   0x4   :  { %p456_p2 = pnand %p454_p1, %p451_p0 }
   0x6   :  { %459 = shalt.err (!%p456_p2)
}
   0x7   :  { %s460_s24 = scalar_lea.vmem %s18_s16, 768  ;;  %p465_p4 = scmp.lt.s32.totalorder %s18_s16, %s18_s16 }
   0x8   :  { %p461_p3 = scmp.ne.s32.totalorder %s18_s16, %s460_s24  ;;  %p466_p5 = scmp.lt.s32.totalorder %s460_s24, %s460_s24 }
   0xa   :  { %p467_p6 = por %p466_p5, %p465_p4 }
   0xc   :  { %p468_p7 = pnand %p467_p6, %p461_p3 }
   0xe   :  { %471 = shalt.err (!%p468_p7)
}
   0xf   :  { %s475_s25 = smov 64   ;;  %s476_s26 = smov 4  }
  0x10   :  { %23 = dma.hbm_to_vmem [thread:$0]  %s561_s1, 768, %s18_s16, [#allocation3], %s475_s25, %s475_s25, %s476_s26  }
  0x11   :  { %472 = dma.done.wait [#allocation3], 768  }
  0x12   :  { %473 = vsyncadd [#allocation3], 4294966528  ;;  %v477_v0 = vmov 0.0   ;;  %vm478_vm0 = vmmov 0   ;;  %v437_v1 = vld [vmem:[#allocation2] sm:$0xff]   ;;  %v438_v2 = vld [vmem:[#allocation2 + $0x8] sm:$0xff]   ;;  %v137_v34 = vlaneseq }
  0x13   :  { %408 = vmatprep.subr.bf16.mxu0 %v477_v0  ;;  %412 = vmatprep.mubr.msk.bf16.mxu0 %vm478_vm0, %v477_v0  ;;  %v439_v3 = vld [vmem:[%s560_s0] sm:$0xff]   ;;  %vm64_vm1 = vcmask 261120   ;;  %v440_v4 = vld [vmem:[#allocation2 + $0x10] sm:$0xff]   ;;  %v441_v5 = vld [vmem:[#allocation2 + $0x18] sm:$0xff]  }
  0x14   :  { %416 = vmatprep.subr.bf16.mxu1 %v477_v0  ;;  %420 = vmatprep.mubr.msk.bf16.mxu1 %vm478_vm0, %v477_v0  ;;  %v138_v35 = vshrl.u32 %v137_v34, 7  ;;  %v130_v36 = vld [vmem:[%s562_s2] sm:$0x1]  ;;  %v443_v49 = vld [vmem:[#allocation2 + $0x28] sm:$0xff]  }
  0x15   :  { %409 = vmatpush3.bf16.msra.mxu0 %v437_v1  ;;  %417 = vmatpush3.bf16.msra.mxu1 %v440_v4  ;;  %v386_v41 = vld [vmem:[%s563_s3] ss:$0 sm:$0xff] }
  0x16   :  { %410 = vmatprep.subr.bf16.mxu0 %v477_v0  ;;  %418 = vmatprep.subr.bf16.mxu1 %v477_v0  ;;  %v531_v37 = vsub.s32 0, %v138_v35  ;;  %v442_v48 = vld [vmem:[#allocation2 + $0x20] sm:$0xff]  }
  0x19   :  { %411 = vmatpush3.bf16.msra.mxu0 %v438_v2  ;;  %419 = vmatpush3.bf16.msra.mxu1 %v441_v5 }
  0x1a   :  { %424 = vmatprep.subr.bf16.mxu0 %v477_v0 }
  0x1c   :  { %413 = vmatmul.mubr.msk.bf16.vlgmr.msra.gmra.mrb[0].mxu0 %vm64_vm1, %v439_v3 }
  0x1d   :  { %428 = vmatprep.mubr.msk.bf16.mxu0 %vm478_vm0, %v477_v0  ;;  %425 = vmatpush3.bf16.msra.mxu0 %v442_v48 }
  0x1e   :  { %426 = vmatprep.subr.bf16.mxu0 %v477_v0 }
  0x21   :  { %427 = vmatpush3.bf16.msra.mxu0 %v443_v49 }
  0xef   :  { %v102_v6 = vpop.f32.mrb[0].mxu0 }
  0xf0   :  { %v414_v7 = vpop.f32.mrb[1].mxu0  ;;  %v117_v9 = vmul.f32 %v102_v6, %v102_v6 }
  0xf1   :  { %v105_v8 = vpop.f32.mrb[2].mxu0 }
  0xf2   :  { %v109_v10 = vadd.f32 %v105_v8, %v102_v6  ;;  %v118_v11 = vmul.f32 %v105_v8, %v105_v8  ;;  %v415_v12 = vpop.f32.mrb[3].mxu0 }
  0xf4   :  { %v110_v13 = vrot.slane %v109_v10, 4  ;;  %v119_v14 = vadd.f32 %v118_v11, %v117_v9 }
  0xf6   :  { %v111_v15 = vadd.f32 %v110_v13, %v109_v10  ;;  %v120_v16 = vrot.slane %v119_v14, 4 }
  0xf8   :  { %v112_v17 = vrot.slane %v111_v15, 2  ;;  %v121_v18 = vadd.f32 %v120_v16, %v119_v14  ;;  %v390_v14 = vld [vmem:[%s562_s2 + $0x1] sm:$0x1] }
  0xfa   :  { %v113_v19 = vadd.f32 %v112_v17, %v111_v15  ;;  %v122_v20 = vrot.slane %v121_v18, 2 }
  0xfc   :  { %v114_v21 = vrot.slane %v113_v19, 1  ;;  %v123_v22 = vadd.f32 %v122_v20, %v121_v18  ;;  %v392_v18 = vld [vmem:[%s563_s3 + $0x1] ss:$0 sm:$0xff] }
  0xfe   :  { %v115_v23 = vadd.f32 %v114_v21, %v113_v19  ;;  %v124_v24 = vrot.slane %v123_v22, 1 }
 0x100   :  { %v116_v25 = vmul.f32 0.125, %v115_v23  ;;  %v125_v26 = vadd.f32 %v124_v24, %v123_v22 }
 0x102   :  { %v126_v27 = vmul.f32 0.125, %v125_v26  ;;  %v127_v28 = vmul.f32 %v116_v25, %v116_v25  ;;  %v134_v29 = vsub.f32 %v102_v6, %v116_v25  ;;  %v135_v30 = vsub.f32 %v105_v8, %v116_v25 }
 0x104   :  { %v128_v31 = vsub.f32 %v126_v27, %v127_v28 }
 0x106   :  { %v129_v32 = vmax.f32 %v128_v31, 0.0 }
 0x108   :  { %v131_v33 = vadd.f32 1e-05, %v129_v32 }
 0x10a   :  { %444 = vrsqrt.f32 %v131_v33 }
 0x114   :  { %v445_v38 = vpop.eup %444 }
 0x115   :  { %v133_v39 = vmul.f32 %v445_v38, %v130_v36 }
 0x117   :  { %v140_v40 = vrot.slane %v133_v39, %v531_v37 }
 0x119   :  { %v142_v42 = vmul.f32 %v140_v40, %v134_v29  ;;  %v143_v43 = vmul.f32 %v140_v40, %v135_v30 }
 0x11b   :  { %v152_v44 = vadd.f32 %v386_v41, %v143_v43  ;;  %v151_v46 = vadd.f32 %v386_v41, %v142_v42 }
 0x11d   :  { %v154_v45 = vmul.f32 0.0, %v152_v44 }
 0x11f   :  { %v155_v47 = vpack.c.bf16 %v154_v45, %v151_v46 }
 0x121   :  { %421 = vmatmul.mubr.msk.bf16.vlgmr.msra.gmra.mrb[0].mxu1 %vm64_vm1, %v155_v47 }
 0x1f4   :  { %v210_v50 = vpop.f32.mrb[0].mxu1 }
 0x1f5   :  { %v422_v51 = vpop.f32.mrb[1].mxu1  ;;  %v225_v53 = vmul.f32 %v210_v50, %v210_v50 }
 0x1f6   :  { %v213_v52 = vpop.f32.mrb[2].mxu1 }
 0x1f7   :  { %v217_v54 = vadd.f32 %v213_v52, %v210_v50  ;;  %v226_v55 = vmul.f32 %v213_v52, %v213_v52  ;;  %v423_v56 = vpop.f32.mrb[3].mxu1 }
 0x1f9   :  { %v218_v57 = vrot.slane %v217_v54, 4  ;;  %v227_v58 = vadd.f32 %v226_v55, %v225_v53 }
 0x1fb   :  { %v219_v59 = vadd.f32 %v218_v57, %v217_v54  ;;  %v228_v60 = vrot.slane %v227_v58, 4  ;;  %v396_v54 = vld [vmem:[%s562_s2 + $0x2] sm:$0x1] }
 0x1fd   :  { %v220_v61 = vrot.slane %v219_v59, 2  ;;  %v229_v62 = vadd.f32 %v228_v60, %v227_v58  ;;  %v398_v58 = vld [vmem:[%s563_s3 + $0x2] ss:$0 sm:$0xff] }
 0x1ff   :  { %v221_v63 = vadd.f32 %v220_v61, %v219_v59  ;;  %v230_v1 = vrot.slane %v229_v62, 2 }
 0x201   :  { %v222_v2 = vrot.slane %v221_v63, 1  ;;  %v231_v3 = vadd.f32 %v230_v1, %v229_v62 }
 0x203   :  { %v223_v0 = vadd.f32 %v222_v2, %v221_v63  ;;  %v232_v4 = vrot.slane %v231_v3, 1 }
 0x205   :  { %v224_v5 = vmul.f32 0.125, %v223_v0  ;;  %v233_v6 = vadd.f32 %v232_v4, %v231_v3 }
 0x207   :  { %v234_v7 = vmul.f32 0.125, %v233_v6  ;;  %v235_v8 = vmul.f32 %v224_v5, %v224_v5  ;;  %v243_v9 = vsub.f32 %v210_v50, %v224_v5  ;;  %v244_v10 = vsub.f32 %v213_v52, %v224_v5 }
 0x209   :  { %v236_v11 = vsub.f32 %v234_v7, %v235_v8 }
 0x20b   :  { %v237_v12 = vmax.f32 %v236_v11, 0.0 }
 0x20d   :  { %v240_v13 = vadd.f32 1e-05, %v237_v12 }
 0x20f   :  { %446 = vrsqrt.f32 %v240_v13 }
 0x219   :  { %v447_v15 = vpop.eup %446 }
 0x21a   :  { %v242_v16 = vmul.f32 %v447_v15, %v390_v14 }
 0x21c   :  { %v249_v17 = vrot.slane %v242_v16, %v531_v37 }
 0x21e   :  { %v251_v19 = vmul.f32 %v249_v17, %v243_v9  ;;  %v252_v20 = vmul.f32 %v249_v17, %v244_v10 }
 0x220   :  { %v262_v21 = vadd.f32 %v392_v18, %v252_v20  ;;  %v261_v22 = vadd.f32 %v392_v18, %v251_v19 }
 0x222   :  { %v264_v23 = vmul.f32 0.0, %v262_v21 }
 0x224   :  { %v265_v24 = vpack.c.bf16 %v264_v23, %v261_v22 }
 0x226   :  { %429 = vmatmul.mubr.msk.bf16.vlgmr.msra.gmra.mrb[4].mxu0 %vm64_vm1, %v265_v24 }
 0x2f9   :  { %v320_v25 = vpop.f32.mrb[4].mxu0 }
 0x2fa   :  { %v430_v26 = vpop.f32.mrb[5].mxu0  ;;  %v335_v28 = vmul.f32 %v320_v25, %v320_v25 }
 0x2fb   :  { %v323_v27 = vpop.f32.mrb[6].mxu0 }
 0x2fc   :  { %v327_v29 = vadd.f32 %v323_v27, %v320_v25  ;;  %v336_v30 = vmul.f32 %v323_v27, %v323_v27  ;;  %v431_v31 = vpop.f32.mrb[7].mxu0 }
 0x2fe   :  { %v328_v32 = vrot.slane %v327_v29, 4  ;;  %v337_v33 = vadd.f32 %v336_v30, %v335_v28 }
 0x300   :  { %v329_v34 = vadd.f32 %v328_v32, %v327_v29  ;;  %v338_v35 = vrot.slane %v337_v33, 4 }
 0x302   :  { %v330_v36 = vrot.slane %v329_v34, 2  ;;  %v339_v38 = vadd.f32 %v338_v35, %v337_v33 }
 0x304   :  { %v331_v39 = vadd.f32 %v330_v36, %v329_v34  ;;  %v340_v40 = vrot.slane %v339_v38, 2 }
 0x306   :  { %v332_v41 = vrot.slane %v331_v39, 1  ;;  %v341_v42 = vadd.f32 %v340_v40, %v339_v38 }
 0x308   :  { %v333_v43 = vadd.f32 %v332_v41, %v331_v39  ;;  %v342_v44 = vrot.slane %v341_v42, 1 }
 0x30a   :  { %v334_v45 = vmul.f32 0.125, %v333_v43  ;;  %v343_v46 = vadd.f32 %v342_v44, %v341_v42 }
 0x30c   :  { %v344_v47 = vmul.f32 0.125, %v343_v46  ;;  %v345_v48 = vmul.f32 %v334_v45, %v334_v45  ;;  %v353_v49 = vsub.f32 %v320_v25, %v334_v45  ;;  %v354_v50 = vsub.f32 %v323_v27, %v334_v45 }
 0x30e   :  { %v346_v51 = vsub.f32 %v344_v47, %v345_v48 }
 0x310   :  { %v347_v52 = vmax.f32 %v346_v51, 0.0 }
 0x312   :  { %v350_v53 = vadd.f32 1e-05, %v347_v52 }
 0x314   :  { %448 = vrsqrt.f32 %v350_v53 }
 0x31e   :  { %v449_v55 = vpop.eup %448 }
 0x31f   :  { %v352_v56 = vmul.f32 %v449_v55, %v396_v54 }
 0x321   :  { %v359_v57 = vrot.slane %v352_v56, %v531_v37 }
 0x323   :  { %v361_v59 = vmul.f32 %v359_v57, %v353_v49  ;;  %v362_v60 = vmul.f32 %v359_v57, %v354_v50 }
 0x325   :  { %v371_v61 = vadd.f32 %v398_v58, %v361_v59  ;;  %v372_v62 = vadd.f32 %v398_v58, %v362_v60 }
 0x327   :  { %v374_v63 = vmul.f32 0.0, %v372_v62  ;;  %375 = vst [vmem:[%s564_s4] sm:$0xff] %v371_v61 }
 0x329   :  { %376 = vst [vmem:[%s564_s4 + $0x8] sm:$0xff] %v374_v63 }
 0x32a   :  { %381 = vsyncpa [#allocation3], 1 }

</bundles_post_ra>
